<compile_context>
chip_gen: v7x
topology: tpu7x:2x2x1
jax: 0.10.0
libtpu: 0.0.40
codegen_flags: <defaults>
</compile_context>

<pallas_src>
import functools
import math

import jax
import jax.numpy as jnp
import numpy as np
from jax.experimental import pallas as pl
from jax.experimental.pallas import tpu as pltpu


# ----------------------------------------------------------------------------
# Fused Q/K/V projection kernel (single launch, x DMA'd once, tiled over rows)
# ----------------------------------------------------------------------------
def _qkv_kernel(x_ref, wq_ref, wk_ref, wv_ref, b_ref, q_ref, k_ref, v_ref):
    x = x_ref[...]
    q_ref[...] = (jnp.dot(x, wq_ref[...], preferred_element_type=jnp.float32)
                  + b_ref[0:1, :]).astype(q_ref.dtype)
    k_ref[...] = (jnp.dot(x, wk_ref[...], preferred_element_type=jnp.float32)
                  + b_ref[1:2, :]).astype(k_ref.dtype)
    v_ref[...] = (jnp.dot(x, wv_ref[...], preferred_element_type=jnp.float32)
                  + b_ref[2:3, :]).astype(v_ref.dtype)


def _pick_row_tile(m):
    for t in (512, 256, 128, 64, 32, 16, 8):
        if t <= m and m % t == 0:
            return t
    return m


def pallas_qkv_projection(x2d, wq, wk, wv, b_qkv):
    M, C = x2d.shape
    tm = _pick_row_tile(M)
    out = jax.ShapeDtypeStruct((M, C), jnp.float32)
    flops = int(6 * M * C * C)
    bytes_acc = int(4 * (M * C + 3 * C * C + 3 * C + 3 * M * C))
    return pl.pallas_call(
        _qkv_kernel,
        out_shape=(out, out, out),
        grid=(M // tm,),
        in_specs=[
            pl.BlockSpec((tm, C), lambda i: (i, 0)),   # x rows (tiled, pipelined)
            pl.BlockSpec((C, C), lambda i: (0, 0)),    # Wq
            pl.BlockSpec((C, C), lambda i: (0, 0)),    # Wk
            pl.BlockSpec((C, C), lambda i: (0, 0)),    # Wv
            pl.BlockSpec((3, C), lambda i: (0, 0)),    # stacked biases
        ],
        out_specs=(
            pl.BlockSpec((tm, C), lambda i: (i, 0)),
            pl.BlockSpec((tm, C), lambda i: (i, 0)),
            pl.BlockSpec((tm, C), lambda i: (i, 0)),
        ),
        compiler_params=pltpu.CompilerParams(
            dimension_semantics=("parallel",),
            vmem_limit_bytes=32 * 1024 * 1024),
        cost_estimate=pl.CostEstimate(flops=flops, transcendentals=0,
                                      bytes_accessed=bytes_acc),
    )(x2d, wq, wk, wv, b_qkv)


# ----------------------------------------------------------------------------
# Block-sparse flash-style attention kernel.
# grid = (B, num_q_blocks, num_kv_blocks); layout is scalar-prefetched into SMEM
# and disallowed (head, q-block, kv-block) tiles are skipped via pl.when.
# ----------------------------------------------------------------------------
def _attn_kernel(layout_ref, q_ref, k_ref, v_ref, mask_ref, *rest,
                 num_heads, head_dim, scale, has_bias):
    if has_bias:
        bias_ref, o_ref, m_sc, l_sc, acc_sc = rest
    else:
        bias_ref = None
        o_ref, m_sc, l_sc, acc_sc = rest

    qb = pl.program_id(1)
    kv = pl.program_id(2)
    nkv = pl.num_programs(2)

    @pl.when(kv == 0)
    def _init():
        m_sc[...] = jnp.full_like(m_sc, -1e30)
        l_sc[...] = jnp.zeros_like(l_sc)
        acc_sc[...] = jnp.zeros_like(acc_sc)

    gate = mask_ref[0, 0] != 0.0            # (QB, KB) 'mul' attention mask tile
    if has_bias:
        bias = bias_ref[0, 0]               # (QB, KB) additive camera bias tile

    q_all = q_ref[0]                        # (QB, C)
    k_all = k_ref[0]                        # (KB, C)
    v_all = v_ref[0]                        # (KB, C)

    for h in range(num_heads):              # static, short -> unrolled
        @pl.when(layout_ref[h, qb, kv] != 0)    # skip disallowed sparse blocks
        def _compute(h=h):
            lo = h * head_dim
            q_h = q_all[:, lo:lo + head_dim]    # (QB, D)
            k_h = k_all[:, lo:lo + head_dim]    # (KB, D)
            v_h = v_all[:, lo:lo + head_dim]    # (KB, D)

            s = jnp.dot(q_h, k_h.T, preferred_element_type=jnp.float32) * scale
            if has_bias:
                s = s + bias
            s = jnp.where(gate, s, jnp.float32(-1e30))

            m_prev = m_sc[h]                                   # (QB, 1)
            m_new = jnp.maximum(m_prev, jnp.max(s, axis=-1, keepdims=True))
            alpha = jnp.exp(m_prev - m_new)
            p = jnp.where(gate, jnp.exp(s - m_new), jnp.float32(0.0))

            l_sc[h] = alpha * l_sc[h] + jnp.sum(p, axis=-1, keepdims=True)
            acc_sc[h] = alpha * acc_sc[h] + jnp.dot(
                p, v_h, preferred_element_type=jnp.float32)
            m_sc[h] = m_new

    @pl.when(kv == nkv - 1)
    def _finalize():
        for h in range(num_heads):
            lo = h * head_dim
            l_h = l_sc[h]                                      # (QB, 1)
            has = l_h > 0.0
            inv = jnp.where(has, 1.0 / jnp.where(has, l_h, 1.0), jnp.float32(0.0))
            # fully-masked rows (l == 0) produce exactly zero output
            o_ref[0, :, lo:lo + head_dim] = (acc_sc[h] * inv).astype(o_ref.dtype)


def pallas_sparse_attention(q, k, v, layout, mask_tiled, bias_tiled, *,
                            num_heads, block):
    B, S, C = q.shape
    D = C // num_heads
    NB = S // block
    has_bias = bias_tiled is not None

    kern = functools.partial(_attn_kernel, num_heads=num_heads, head_dim=D,
                             scale=1.0 / math.sqrt(D), has_bias=has_bias)

    q_spec = pl.BlockSpec((1, block, C), lambda b, qb, kv, lay: (b, qb, 0))
    kv_spec = pl.BlockSpec((1, block, C), lambda b, qb, kv, lay: (b, kv, 0))
    tile_spec = pl.BlockSpec((1, 1, block, block),
                             lambda b, qb, kv, lay: (qb, kv, 0, 0))

    in_specs = [q_spec, kv_spec, kv_spec, tile_spec]
    args = [q, k, v, mask_tiled]
    if has_bias:
        in_specs.append(tile_spec)
        args.append(bias_tiled)

    grid_spec = pltpu.PrefetchScalarGridSpec(
        num_scalar_prefetch=1,                 # block layout -> SMEM
        grid=(B, NB, NB),
        in_specs=in_specs,
        out_specs=pl.BlockSpec((1, block, C), lambda b, qb, kv, lay: (b, qb, 0)),
        scratch_shapes=[
            pltpu.VMEM((num_heads, block, 1), jnp.float32),   # running max
            pltpu.VMEM((num_heads, block, 1), jnp.float32),   # running denom
            pltpu.VMEM((num_heads, block, D), jnp.float32),   # running numerator
        ],
    )

    flops = int(4 * B * num_heads * S * S * D)
    bytes_acc = int(4 * (4 * B * S * C + 2 * S * S))
    return pl.pallas_call(
        kern,
        out_shape=jax.ShapeDtypeStruct((B, S, C), jnp.float32),
        grid_spec=grid_spec,
        compiler_params=pltpu.CompilerParams(
            dimension_semantics=("parallel", "parallel", "arbitrary"),
            vmem_limit_bytes=32 * 1024 * 1024),
        cost_estimate=pl.CostEstimate(flops=flops,
                                      transcendentals=int(B * num_heads * S * S),
                                      bytes_accessed=bytes_acc),
    )(layout, *args)


# ----------------------------------------------------------------------------
# Module wrapper
# ----------------------------------------------------------------------------
class CustomSparseSelfAttentionPallas:
    def __init__(self, hidden_size, num_heads, sparse_block_size, layout, key):
        assert hidden_size % num_heads == 0
        self.hidden_size = hidden_size
        self.num_heads = num_heads
        self.head_dim = hidden_size // num_heads
        self.block = sparse_block_size
        self.layout = jnp.asarray(layout, jnp.int32)   # (H, S//blk, S//blk)

        # Deterministic nn.Linear-style init: U(-1/sqrt(fan_in), 1/sqrt(fan_in))
        bound = 1.0 / math.sqrt(hidden_size)
        keys = jax.random.split(key, 6)
        def u(k, shape):
            return jax.random.uniform(k, shape, jnp.float32, -bound, bound)
        self.wq, self.bq = u(keys[0], (hidden_size, hidden_size)), u(keys[1], (hidden_size,))
        self.wk, self.bk = u(keys[2], (hidden_size, hidden_size)), u(keys[3], (hidden_size,))
        self.wv, self.bv = u(keys[4], (hidden_size, hidden_size)), u(keys[5], (hidden_size,))
        self.b_qkv = jnp.stack([self.bq, self.bk, self.bv], axis=0)   # (3, C)

    def __call__(self, hidden_states, attention_mask, camera_bias=None):
        B, S, C = hidden_states.shape
        blk = self.block
        assert S % blk == 0
        NB = S // blk

        # Fused Q/K/V projection (one launch; x read once).
        x2d = hidden_states.reshape(B * S, C)
        q2d, k2d, v2d = pallas_qkv_projection(x2d, self.wq, self.wk, self.wv, self.b_qkv)
        q = q2d.reshape(B, S, C)
        k = k2d.reshape(B, S, C)
        v = v2d.reshape(B, S, C)

        # Pre-tile (S,S) mask / bias into (NB, NB, blk, blk): each grid step DMAs
        # exactly the (blk, blk) tile it needs (no dense H x S x S materialization).
        def tile(x):
            return (x.astype(jnp.float32)
                    .reshape(NB, blk, NB, blk).transpose(0, 2, 1, 3))
        mask_tiled = tile(attention_mask)
        bias_tiled = None if camera_bias is None else tile(camera_bias)

        # Output is already (B, S, C) -- no trailing head transpose/reshape.
        return pallas_sparse_attention(q, k, v, self.layout, mask_tiled, bias_tiled,
                                       num_heads=self.num_heads, block=blk)


# ----------------------------------------------------------------------------
# Pure-JAX reference for correctness checking
# ----------------------------------------------------------------------------
def reference_forward(mod, hidden_states, attention_mask, camera_bias):
    B, S, C = hidden_states.shape
    H, D = mod.num_heads, mod.head_dim
    x2d = hidden_states.reshape(B * S, C)
    q = (x2d @ mod.wq + mod.bq).reshape(B, S, H, D).transpose(0, 2, 1, 3)
    k = (x2d @ mod.wk + mod.bk).reshape(B, S, H, D).transpose(0, 2, 1, 3)
    v = (x2d @ mod.wv + mod.bv).reshape(B, S, H, D).transpose(0, 2, 1, 3)
    blk = mod.block
    layout_dense = jnp.repeat(jnp.repeat(mod.layout.astype(jnp.float32), blk, 1), blk, 2)
    allowed = layout_dense * (attention_mask != 0).astype(jnp.float32)[None]      # (H,S,S)
    bias = 0.0 if camera_bias is None else camera_bias[None, None]
    s = jnp.einsum("bhqd,bhkd->bhqk", q, k) / math.sqrt(D) + bias
    s = jnp.where(allowed[None] > 0, s, -1e30)
    m = jnp.max(s, -1, keepdims=True)
    p = jnp.where(allowed[None] > 0, jnp.exp(s - m), 0.0)
    den = jnp.sum(p, -1, keepdims=True)
    has = den > 0
    ctx = jnp.einsum("bhqk,bhkd->bhqd", p, v) / jnp.where(has, den, 1.0)
    ctx = jnp.where(has, ctx, 0.0)
    return ctx.transpose(0, 2, 1, 3).reshape(B, S, C)


if __name__ == "__main__":
    # Small config consistent with the module:
    #   hidden_size=32, num_heads=4 (head_dim=8), sparse_block_size=16,
    #   gpt_block_size (seq len) = 64 -> 4x4 block layout per head.
    B, S, C, H, BLK = 2, 64, 32, 4, 16
    NB = S // BLK

    key = jax.random.PRNGKey(0)
    k_in, k_bias, k_mod = jax.random.split(key, 3)

    hidden_states = jax.random.normal(k_in, (B, S, C), jnp.float32)

    # Deterministic block-sparse layout (different per head): diagonal blocks,
    # block-column 0, and one head-dependent off-diagonal band.
    rows = np.arange(NB)[:, None]
    cols = np.arange(NB)[None, :]
    layout_np = np.zeros((H, NB, NB), np.int32)
    for h in range(H):
        layout_np[h] = ((rows == cols) | (cols == 0) | (cols == (rows + h) % NB)).astype(np.int32)
    layout = jnp.asarray(layout_np)

    # Multiplicative attention mask (causal) -- 0/1, 'mul' mode semantics.
    attention_mask = jnp.tril(jnp.ones((S, S), jnp.float32))

    # Camera bias ("add_mask"): small deterministic additive bias, shared per head.
    camera_bias = 0.1 * jax.random.normal(k_bias, (S, S), jnp.float32)

    mod = CustomSparseSelfAttentionPallas(C, H, BLK, layout, k_mod)

    out = mod(hidden_states, attention_mask, camera_bias)
    out = jax.block_until_ready(out)

    ref = reference_forward(mod, hidden_states, attention_mask, camera_bias)
    np.testing.assert_allclose(np.asarray(out), np.asarray(ref), rtol=2e-4, atol=2e-4)
    assert out.shape == (B, S, C)

    print("KERNEL_OK")
</pallas_src>

<mosaic_0001>
module attributes {stable_mosaic.version = 11 : i64} {
  func.func @_qkv_kernel(%arg0: i32, %arg1: memref<128x32xf32, #tpu.memory_space<vmem>>, %arg2: memref<32x32xf32, #tpu.memory_space<vmem>>, %arg3: memref<32x32xf32, #tpu.memory_space<vmem>>, %arg4: memref<32x32xf32, #tpu.memory_space<vmem>>, %arg5: memref<3x32xf32, #tpu.memory_space<vmem>>, %arg6: memref<128x32xf32, #tpu.memory_space<vmem>>, %arg7: memref<128x32xf32, #tpu.memory_space<vmem>>, %arg8: memref<128x32xf32, #tpu.memory_space<vmem>>) attributes {dimension_semantics = [#tpu.dimension_semantics<parallel>], iteration_bounds = array<i64: 1>, scalar_prefetch = 0 : i64, scratch_operands = 0 : i64, tpu.core_type = #tpu.core_type<tc>, window_params = [{transform_indices = @transform_0, window_bounds = array<i64: 128, 32>}, {pipeline_mode = #tpu.pipeline_mode<synchronous>, transform_indices = @transform_1, window_bounds = array<i64: 32, 32>}, {pipeline_mode = #tpu.pipeline_mode<synchronous>, transform_indices = @transform_2, window_bounds = array<i64: 32, 32>}, {pipeline_mode = #tpu.pipeline_mode<synchronous>, transform_indices = @transform_3, window_bounds = array<i64: 32, 32>}, {pipeline_mode = #tpu.pipeline_mode<synchronous>, transform_indices = @transform_4, window_bounds = array<i64: 3, 32>}, {transform_indices = @transform_5, window_bounds = array<i64: 128, 32>}, {transform_indices = @transform_6, window_bounds = array<i64: 128, 32>}, {transform_indices = @transform_7, window_bounds = array<i64: 128, 32>}]} {
    %c0 = arith.constant 0 : index
    %c0_0 = arith.constant 0 : index
    %0 = vector.load %arg1[%c0, %c0_0] : memref<128x32xf32, #tpu.memory_space<vmem>>, vector<128x32xf32>
    %c0_1 = arith.constant 0 : index
    %c0_2 = arith.constant 0 : index
    %1 = vector.load %arg2[%c0_1, %c0_2] : memref<32x32xf32, #tpu.memory_space<vmem>>, vector<32x32xf32>
    %cst = arith.constant dense<0.000000e+00> : vector<128x32xf32>
    %2 = tpu.matmul %0, %1, %cst {dimension_numbers = #tpu.dot_dimension_numbers<[1], [0], [0], [1], [0, 0, 1, 1], [], []>} : vector<128x32xf32>, vector<32x32xf32>, vector<128x32xf32> -> vector<128x32xf32>
    %c0_3 = arith.constant 0 : index
    %c0_4 = arith.constant 0 : index
    %3 = vector.load %arg5[%c0_3, %c0_4] : memref<3x32xf32, #tpu.memory_space<vmem>>, vector<1x32xf32>
    %4 = vector.broadcast %3 : vector<1x32xf32> to vector<128x32xf32>
    %5 = arith.addf %2, %4 : vector<128x32xf32>
    %c0_5 = arith.constant 0 : index
    %c0_6 = arith.constant 0 : index
    %6 = vector.load %arg6[%c0_5, %c0_6] : memref<128x32xf32, #tpu.memory_space<vmem>>, vector<128x32xf32>
    tpu.vector_store %arg6[%c0_5, %c0_6], %5 {strides = array<i32>} : memref<128x32xf32, #tpu.memory_space<vmem>>, vector<128x32xf32>,
    %c0_7 = arith.constant 0 : index
    %c0_8 = arith.constant 0 : index
    %7 = vector.load %arg3[%c0_7, %c0_8] : memref<32x32xf32, #tpu.memory_space<vmem>>, vector<32x32xf32>
    %cst_9 = arith.constant dense<0.000000e+00> : vector<128x32xf32>
    %8 = tpu.matmul %0, %7, %cst_9 {dimension_numbers = #tpu.dot_dimension_numbers<[1], [0], [0], [1], [0, 0, 1, 1], [], []>} : vector<128x32xf32>, vector<32x32xf32>, vector<128x32xf32> -> vector<128x32xf32>
    %c1 = arith.constant 1 : index
    %c0_10 = arith.constant 0 : index
    %9 = vector.load %arg5[%c1, %c0_10] : memref<3x32xf32, #tpu.memory_space<vmem>>, vector<1x32xf32>
    %10 = vector.broadcast %9 : vector<1x32xf32> to vector<128x32xf32>
    %11 = arith.addf %8, %10 : vector<128x32xf32>
    %c0_11 = arith.constant 0 : index
    %c0_12 = arith.constant 0 : index
    %12 = vector.load %arg7[%c0_11, %c0_12] : memref<128x32xf32, #tpu.memory_space<vmem>>, vector<128x32xf32>
    tpu.vector_store %arg7[%c0_11, %c0_12], %11 {strides = array<i32>} : memref<128x32xf32, #tpu.memory_space<vmem>>, vector<128x32xf32>,
    %c0_13 = arith.constant 0 : index
    %c0_14 = arith.constant 0 : index
    %13 = vector.load %arg4[%c0_13, %c0_14] : memref<32x32xf32, #tpu.memory_space<vmem>>, vector<32x32xf32>
    %cst_15 = arith.constant dense<0.000000e+00> : vector<128x32xf32>
    %14 = tpu.matmul %0, %13, %cst_15 {dimension_numbers = #tpu.dot_dimension_numbers<[1], [0], [0], [1], [0, 0, 1, 1], [], []>} : vector<128x32xf32>, vector<32x32xf32>, vector<128x32xf32> -> vector<128x32xf32>
    %c2 = arith.constant 2 : index
    %c0_16 = arith.constant 0 : index
    %15 = vector.load %arg5[%c2, %c0_16] : memref<3x32xf32, #tpu.memory_space<vmem>>, vector<1x32xf32>
    %16 = vector.broadcast %15 : vector<1x32xf32> to vector<128x32xf32>
    %17 = arith.addf %14, %16 : vector<128x32xf32>
    %c0_17 = arith.constant 0 : index
    %c0_18 = arith.constant 0 : index
    %18 = vector.load %arg8[%c0_17, %c0_18] : memref<128x32xf32, #tpu.memory_space<vmem>>, vector<128x32xf32>
    tpu.vector_store %arg8[%c0_17, %c0_18], %17 {strides = array<i32>} : memref<128x32xf32, #tpu.memory_space<vmem>>, vector<128x32xf32>,
    return
  }
  func.func @transform_0(%arg0: i32) -> (i32, i32) {
    %c0_i32 = arith.constant 0 : i32
    %c0_i32_0 = arith.constant 0 : i32
    return %arg0, %c0_i32 : i32, i32
  }
  func.func @transform_1(%arg0: i32) -> (i32, i32) {
    %c0_i32 = arith.constant 0 : i32
    %c0_i32_0 = arith.constant 0 : i32
    %c0_i32_1 = arith.constant 0 : i32
    return %c0_i32, %c0_i32_0 : i32, i32
  }
  func.func @transform_2(%arg0: i32) -> (i32, i32) {
    %c0_i32 = arith.constant 0 : i32
    %c0_i32_0 = arith.constant 0 : i32
    %c0_i32_1 = arith.constant 0 : i32
    return %c0_i32, %c0_i32_0 : i32, i32
  }
  func.func @transform_3(%arg0: i32) -> (i32, i32) {
    %c0_i32 = arith.constant 0 : i32
    %c0_i32_0 = arith.constant 0 : i32
    %c0_i32_1 = arith.constant 0 : i32
    return %c0_i32, %c0_i32_0 : i32, i32
  }
  func.func @transform_4(%arg0: i32) -> (i32, i32) {
    %c0_i32 = arith.constant 0 : i32
    %c0_i32_0 = arith.constant 0 : i32
    %c0_i32_1 = arith.constant 0 : i32
    return %c0_i32, %c0_i32_0 : i32, i32
  }
  func.func @transform_5(%arg0: i32) -> (i32, i32) {
    %c0_i32 = arith.constant 0 : i32
    %c0_i32_0 = arith.constant 0 : i32
    return %arg0, %c0_i32 : i32, i32
  }
  func.func @transform_6(%arg0: i32) -> (i32, i32) {
    %c0_i32 = arith.constant 0 : i32
    %c0_i32_0 = arith.constant 0 : i32
    return %arg0, %c0_i32 : i32, i32
  }
  func.func @transform_7(%arg0: i32) -> (i32, i32) {
    %c0_i32 = arith.constant 0 : i32
    %c0_i32_0 = arith.constant 0 : i32
    return %arg0, %c0_i32 : i32, i32
  }
}

</mosaic_0001>

<bundles_post_ra>
// kernel: tpu_custom_call.1
= control target key start
LH: loop header
LB: loop body
LE: loop exit
PB: predicated region body
PF: predicated region fallthrough
CT: control target
= control target key end

     0   :  { %vm48_vm0 = vcmask 261120   ;;  %s1259_s1 = inlined_call_operand.vmem [shape: f32[32,32], index: 1, kind: input, shape index: {}]   ;;  %s1260_s0 = inlined_call_operand.vmem [shape: f32[128,32], index: 0, kind: input, shape index: {}]   ;;  %s1261_s2 = inlined_call_operand.vmem [shape: f32[32,32], index: 2, kind: input, shape index: {}]   ;;  %s1262_s3 = inlined_call_operand.vmem [shape: f32[32,32], index: 3, kind: input, shape index: {}]   ;;  %s1263_s4 = inlined_call_operand.vmem [shape: f32[3,32], index: 4, kind: input, shape index: {}]   ;;  %s1264_s5 = inlined_call_operand.vmem [shape: f32[128,32], index: 5, kind: output, shape index: {0}]   ;;  %s1265_s6 = inlined_call_operand.vmem [shape: f32[128,32], index: 6, kind: output, shape index: {1}]   ;;  %s1266_s7 = inlined_call_operand.vmem [shape: f32[128,32], index: 7, kind: output, shape index: {2}]  }
   0x1   :  { %v39_v0 = vld [vmem:[%s1259_s1] sm:$0xff]  ;;  %v40_v1 = vld [vmem:[%s1259_s1 + $0x8] sm:$0xff]  ;;  %v41_v2 = vld [vmem:[%s1259_s1 + $0x10] sm:$0xff] }
   0x2   :  { %v817_v3 = vpack.c.bf16 %v40_v1, %v39_v0  ;;  %v42_v4 = vld [vmem:[%s1259_s1 + $0x18] sm:$0xff]  ;;  %v23_v5 = vld [vmem:[%s1260_s0] sm:$0xff]  ;;  %v259_v9 = vld [vmem:[%s1261_s2 + $0x8] sm:$0xff] }
   0x3   :  { %v903_v6 = vld [vmem:[%s1260_s0 + $0x40] sm:$0xff]  ;;  %v821_v7 = vpack.c.bf16 %v42_v4, %v41_v2  ;;  %729 = vmatprep.mubr.msk.f32.mxu0 %vm48_vm0, %v23_v5  ;;  %v429_v11 = vld [vmem:[%s1262_s3 + $0x8] sm:$0xff]  ;;  %v260_v14 = vld [vmem:[%s1261_s2 + $0x10] sm:$0xff] }
   0x4   :  { %741 = vmatprep.mubr.msk.f32.mxu1 %vm48_vm0, %v903_v6  ;;  %v258_v8 = vld [vmem:[%s1261_s2] sm:$0xff]  ;;  %818 = vmatprep.subr.bf16.mxu0 %v817_v3  ;;  %v261_v15 = vld [vmem:[%s1261_s2 + $0x18] sm:$0xff]  ;;  %v430_v16 = vld [vmem:[%s1262_s3 + $0x10] sm:$0xff] }
   0x5   :  { %841 = vmatprep.subr.bf16.mxu1 %v817_v3  ;;  %v428_v10 = vld [vmem:[%s1262_s3] sm:$0xff]  ;;  %820 = vmatpush3.bf16.msra.mxu0 %v817_v3  ;;  %v825_v12 = vpack.c.bf16 %v259_v9, %v258_v8  ;;  %v431_v17 = vld [vmem:[%s1262_s3 + $0x18] sm:$0xff]  ;;  %v24_v18 = vld [vmem:[%s1260_s0 + $0x8] sm:$0xff]  ;;  %v829_v22 = vpack.c.bf16 %v261_v15, %v260_v14 }
   0x6   :  { %843 = vmatpush3.bf16.msra.mxu1 %v817_v3  ;;  %822 = vmatprep.subr.bf16.mxu0 %v821_v7  ;;  %v833_v13 = vpack.c.bf16 %v429_v11, %v428_v10  ;;  %v32_v19 = vld [vmem:[%s1260_s0 + $0x48] sm:$0xff]  ;;  %v25_v20 = vld [vmem:[%s1260_s0 + $0x10] sm:$0xff]  ;;  %v837_v23 = vpack.c.bf16 %v431_v17, %v430_v16  ;;  %v26_v24 = vld [vmem:[%s1260_s0 + $0x18] sm:$0xff] }
   0x7   :  { %842 = vmatprep.subr.bf16.mxu1 %v821_v7  ;;  %v33_v21 = vld [vmem:[%s1260_s0 + $0x50] sm:$0xff]  ;;  %v34_v25 = vld [vmem:[%s1260_s0 + $0x58] sm:$0xff]  ;;  %v27_v26 = vld [vmem:[%s1260_s0 + $0x20] sm:$0xff] }
   0x8   :  { %v35_v27 = vld [vmem:[%s1260_s0 + $0x60] sm:$0xff]  ;;  %v28_v28 = vld [vmem:[%s1260_s0 + $0x28] sm:$0xff]  ;;  %v29_v30 = vld [vmem:[%s1260_s0 + $0x30] sm:$0xff] }
   0x9   :  { %824 = vmatpush3.bf16.msra.mxu0 %v821_v7  ;;  %v36_v29 = vld [vmem:[%s1260_s0 + $0x68] sm:$0xff]  ;;  %v37_v31 = vld [vmem:[%s1260_s0 + $0x70] sm:$0xff]  ;;  %v30_v32 = vld [vmem:[%s1260_s0 + $0x38] sm:$0xff] }
   0xa   :  { %844 = vmatpush3.bf16.msra.mxu1 %v821_v7  ;;  %834 = vmatprep.subr.bf16.mxu0 %v833_v13  ;;  %v38_v33 = vld [vmem:[%s1260_s0 + $0x78] sm:$0xff]  ;;  %v610_v34 = vld [vmem:[%s1263_s4] ss:$0 sm:$0xff]  ;;  %v1076_v3 = vld [vmem:[%s1263_s4 + $0x1] ss:$0 sm:$0xff] }
   0xb   :  { %826 = vmatprep.subr.bf16.mxu1 %v825_v12  ;;  %v1081_v4 = vld [vmem:[%s1263_s4 + $0x2] ss:$0 sm:$0xff] }
   0xc   :  { %730 = vmatmul.mubr.msk.f32.vlgmr.msra.gmra.mrb[0].mxu0 %vm48_vm0, %v24_v18 }
   0xd   :  { %742 = vmatmul.mubr.msk.f32.vlgmr.msra.gmra.mrb[0].mxu1 %vm48_vm0, %v32_v19  ;;  %836 = vmatpush3.bf16.msra.mxu0 %v833_v13 }
   0xe   :  { %828 = vmatpush3.bf16.msra.mxu1 %v825_v12  ;;  %732 = vmatprep.mubr.msk.f32.mxu0 %vm48_vm0, %v25_v20 }
   0xf   :  { %744 = vmatprep.mubr.msk.f32.mxu1 %vm48_vm0, %v33_v21  ;;  %830 = vmatprep.subr.bf16.mxu1 %v829_v22 }
  0x10   :  { %838 = vmatprep.subr.bf16.mxu0 %v837_v23  ;;  %733 = vmatmul.mubr.msk.f32.gmra.mrb[2].mxu0 %vm48_vm0, %v26_v24 }
  0x11   :  { %745 = vmatmul.mubr.msk.f32.gmra.mrb[2].mxu1 %vm48_vm0, %v34_v25  ;;  %735 = vmatprep.mubr.msk.f32.mxu0 %vm48_vm0, %v27_v26 }
  0x12   :  { %747 = vmatprep.mubr.msk.f32.mxu1 %vm48_vm0, %v35_v27  ;;  %832 = vmatpush3.bf16.msra.mxu1 %v829_v22 }
  0x13   :  { %840 = vmatpush3.bf16.msra.mxu0 %v837_v23 }
  0x14   :  { %736 = vmatmul.mubr.msk.f32.gmra.mrb[4].mxu0 %vm48_vm0, %v28_v28 }
  0x15   :  { %748 = vmatmul.mubr.msk.f32.gmra.mrb[4].mxu1 %vm48_vm0, %v36_v29  ;;  %738 = vmatprep.mubr.msk.f32.mxu0 %vm48_vm0, %v29_v30 }
  0x16   :  { %750 = vmatprep.mubr.msk.f32.mxu1 %vm48_vm0, %v37_v31 }
  0x18   :  { %739 = vmatmul.mubr.msk.f32.gmra.mrb[6].mxu0 %vm48_vm0, %v30_v32 }
  0x19   :  { %751 = vmatmul.mubr.msk.f32.gmra.mrb[6].mxu1 %vm48_vm0, %v38_v33  ;;  %793 = vmatprep.mubr.msk.f32.mxu0 %vm48_vm0, %v23_v5 }
  0x1a   :  { %761 = vmatprep.mubr.msk.f32.mxu1 %vm48_vm0, %v23_v5 }
  0x1c   :  { %794 = vmatmul.mubr.msk.f32.vlgmr.msra.gmra.mrb[8].mxu0 %vm48_vm0, %v24_v18 }
  0x1d   :  { %762 = vmatmul.mubr.msk.f32.vlgmr.msra.gmra.mrb[8].mxu1 %vm48_vm0, %v24_v18  ;;  %796 = vmatprep.mubr.msk.f32.mxu0 %vm48_vm0, %v25_v20 }
  0x1e   :  { %764 = vmatprep.mubr.msk.f32.mxu1 %vm48_vm0, %v25_v20 }
  0x20   :  { %797 = vmatmul.mubr.msk.f32.gmra.mrb[10].mxu0 %vm48_vm0, %v26_v24 }
  0x21   :  { %765 = vmatmul.mubr.msk.f32.gmra.mrb[10].mxu1 %vm48_vm0, %v26_v24  ;;  %799 = vmatprep.mubr.msk.f32.mxu0 %vm48_vm0, %v27_v26 }
  0x22   :  { %767 = vmatprep.mubr.msk.f32.mxu1 %vm48_vm0, %v27_v26 }
  0x24   :  { %800 = vmatmul.mubr.msk.f32.gmra.mrb[12].mxu0 %vm48_vm0, %v28_v28 }
  0x25   :  { %768 = vmatmul.mubr.msk.f32.gmra.mrb[12].mxu1 %vm48_vm0, %v28_v28  ;;  %802 = vmatprep.mubr.msk.f32.mxu0 %vm48_vm0, %v29_v30 }
  0x26   :  { %770 = vmatprep.mubr.msk.f32.mxu1 %vm48_vm0, %v29_v30 }
  0x28   :  { %803 = vmatmul.mubr.msk.f32.gmra.mrb[14].mxu0 %vm48_vm0, %v30_v32 }
  0x29   :  { %771 = vmatmul.mubr.msk.f32.gmra.mrb[14].mxu1 %vm48_vm0, %v30_v32  ;;  %805 = vmatprep.mubr.msk.f32.mxu0 %vm48_vm0, %v903_v6 }
  0x2a   :  { %773 = vmatprep.mubr.msk.f32.mxu1 %vm48_vm0, %v903_v6 }
  0x2c   :  { %806 = vmatmul.mubr.msk.f32.gmra.mrb[16].mxu0 %vm48_vm0, %v32_v19 }
  0x2d   :  { %774 = vmatmul.mubr.msk.f32.gmra.mrb[16].mxu1 %vm48_vm0, %v32_v19  ;;  %808 = vmatprep.mubr.msk.f32.mxu0 %vm48_vm0, %v33_v21 }
  0x2e   :  { %776 = vmatprep.mubr.msk.f32.mxu1 %vm48_vm0, %v33_v21 }
  0x30   :  { %809 = vmatmul.mubr.msk.f32.gmra.mrb[18].mxu0 %vm48_vm0, %v34_v25 }
  0x31   :  { %777 = vmatmul.mubr.msk.f32.gmra.mrb[18].mxu1 %vm48_vm0, %v34_v25  ;;  %811 = vmatprep.mubr.msk.f32.mxu0 %vm48_vm0, %v35_v27 }
  0x32   :  { %779 = vmatprep.mubr.msk.f32.mxu1 %vm48_vm0, %v35_v27 }
  0x34   :  { %812 = vmatmul.mubr.msk.f32.gmra.mrb[20].mxu0 %vm48_vm0, %v36_v29 }
  0x35   :  { %780 = vmatmul.mubr.msk.f32.gmra.mrb[20].mxu1 %vm48_vm0, %v36_v29  ;;  %814 = vmatprep.mubr.msk.f32.mxu0 %vm48_vm0, %v37_v31 }
  0x36   :  { %782 = vmatprep.mubr.msk.f32.mxu1 %vm48_vm0, %v37_v31 }
  0x38   :  { %815 = vmatmul.mubr.msk.f32.gmra.mrb[22].mxu0 %vm48_vm0, %v38_v33 }
  0x39   :  { %783 = vmatmul.mubr.msk.f32.gmra.mrb[22].mxu1 %vm48_vm0, %v38_v33 }
  0xdf   :  { %v731_v35 = vpop.f32.mrb[0].mxu0 }
  0xe0   :  { %v743_v36 = vpop.f32.mrb[0].mxu1  ;;  %v169_v37 = vadd.f32 %v731_v35, %v610_v34  ;;  %v163_v39 = vpop.f32.mrb[1].mxu0 }
  0xe1   :  { %v209_v38 = vadd.f32 %v743_v36, %v610_v34  ;;  %v203_v40 = vpop.f32.mrb[1].mxu1  ;;  %v164_v41 = vadd.f32 %v610_v34, %v163_v39 }
  0xe2   :  { %v204_v42 = vadd.f32 %v610_v34, %v203_v40  ;;  %243 = vst.msk [vmem:[%s1264_s5 + $0x8] sm:$0xff] %vm48_vm0, %v169_v37 }
  0xe3   :  { %251 = vst.msk [vmem:[%s1264_s5 + $0x48] sm:$0xff] %vm48_vm0, %v209_v38  ;;  %242 = vst.msk [vmem:[%s1264_s5] sm:$0xff] %vm48_vm0, %v164_v41  ;;  %v734_v43 = vpop.f32.mrb[2].mxu0 }
  0xe4   :  { %250 = vst.msk [vmem:[%s1264_s5 + $0x40] sm:$0xff] %vm48_vm0, %v204_v42  ;;  %v746_v44 = vpop.f32.mrb[2].mxu1  ;;  %v179_v45 = vadd.f32 %v734_v43, %v610_v34  ;;  %v173_v47 = vpop.f32.mrb[3].mxu0 }
  0xe5   :  { %v219_v46 = vadd.f32 %v746_v44, %v610_v34  ;;  %v213_v48 = vpop.f32.mrb[3].mxu1  ;;  %v174_v49 = vadd.f32 %v610_v34, %v173_v47 }
  0xe6   :  { %v214_v50 = vadd.f32 %v610_v34, %v213_v48  ;;  %245 = vst.msk [vmem:[%s1264_s5 + $0x18] sm:$0xff] %vm48_vm0, %v179_v45 }
  0xe7   :  { %253 = vst.msk [vmem:[%s1264_s5 + $0x58] sm:$0xff] %vm48_vm0, %v219_v46  ;;  %244 = vst.msk [vmem:[%s1264_s5 + $0x10] sm:$0xff] %vm48_vm0, %v174_v49  ;;  %v737_v51 = vpop.f32.mrb[4].mxu0 }
  0xe8   :  { %252 = vst.msk [vmem:[%s1264_s5 + $0x50] sm:$0xff] %vm48_vm0, %v214_v50  ;;  %v749_v52 = vpop.f32.mrb[4].mxu1  ;;  %v189_v53 = vadd.f32 %v737_v51, %v610_v34  ;;  %v183_v55 = vpop.f32.mrb[5].mxu0 }
  0xe9   :  { %v229_v54 = vadd.f32 %v749_v52, %v610_v34  ;;  %v223_v56 = vpop.f32.mrb[5].mxu1  ;;  %v184_v57 = vadd.f32 %v610_v34, %v183_v55 }
  0xea   :  { %v224_v58 = vadd.f32 %v610_v34, %v223_v56  ;;  %247 = vst.msk [vmem:[%s1264_s5 + $0x28] sm:$0xff] %vm48_vm0, %v189_v53 }
  0xeb   :  { %255 = vst.msk [vmem:[%s1264_s5 + $0x68] sm:$0xff] %vm48_vm0, %v229_v54  ;;  %246 = vst.msk [vmem:[%s1264_s5 + $0x20] sm:$0xff] %vm48_vm0, %v184_v57  ;;  %v740_v59 = vpop.f32.mrb[6].mxu0 }
  0xec   :  { %254 = vst.msk [vmem:[%s1264_s5 + $0x60] sm:$0xff] %vm48_vm0, %v224_v58  ;;  %v752_v60 = vpop.f32.mrb[6].mxu1  ;;  %v199_v61 = vadd.f32 %v740_v59, %v610_v34  ;;  %v193_v63 = vpop.f32.mrb[7].mxu0 }
  0xed   :  { %v239_v62 = vadd.f32 %v752_v60, %v610_v34  ;;  %v233_v0 = vpop.f32.mrb[7].mxu1  ;;  %v194_v1 = vadd.f32 %v610_v34, %v193_v63 }
  0xee   :  { %v234_v2 = vadd.f32 %v610_v34, %v233_v0  ;;  %249 = vst.msk [vmem:[%s1264_s5 + $0x38] sm:$0xff] %vm48_vm0, %v199_v61 }
  0xef   :  { %257 = vst.msk [vmem:[%s1264_s5 + $0x78] sm:$0xff] %vm48_vm0, %v239_v62  ;;  %248 = vst.msk [vmem:[%s1264_s5 + $0x30] sm:$0xff] %vm48_vm0, %v194_v1  ;;  %v795_v6 = vpop.f32.mrb[8].mxu0 }
  0xf0   :  { %256 = vst.msk [vmem:[%s1264_s5 + $0x70] sm:$0xff] %vm48_vm0, %v234_v2  ;;  %v763_v5 = vpop.f32.mrb[8].mxu1  ;;  %v509_v8 = vadd.f32 %v795_v6, %v1081_v4  ;;  %v503_v10 = vpop.f32.mrb[9].mxu0 }
  0xf1   :  { %v339_v7 = vadd.f32 %v763_v5, %v1076_v3  ;;  %v333_v9 = vpop.f32.mrb[9].mxu1  ;;  %v504_v12 = vadd.f32 %v1081_v4, %v503_v10 }
  0xf2   :  { %v334_v11 = vadd.f32 %v1076_v3, %v333_v9  ;;  %583 = vst.msk [vmem:[%s1266_s7 + $0x8] sm:$0xff] %vm48_vm0, %v509_v8 }
  0xf3   :  { %413 = vst.msk [vmem:[%s1265_s6 + $0x8] sm:$0xff] %vm48_vm0, %v339_v7  ;;  %582 = vst.msk [vmem:[%s1266_s7] sm:$0xff] %vm48_vm0, %v504_v12  ;;  %v798_v14 = vpop.f32.mrb[10].mxu0 }
  0xf4   :  { %412 = vst.msk [vmem:[%s1265_s6] sm:$0xff] %vm48_vm0, %v334_v11  ;;  %v766_v13 = vpop.f32.mrb[10].mxu1  ;;  %v519_v16 = vadd.f32 %v798_v14, %v1081_v4  ;;  %v513_v18 = vpop.f32.mrb[11].mxu0 }
  0xf5   :  { %v349_v15 = vadd.f32 %v766_v13, %v1076_v3  ;;  %v343_v17 = vpop.f32.mrb[11].mxu1  ;;  %v514_v20 = vadd.f32 %v1081_v4, %v513_v18 }
  0xf6   :  { %v344_v19 = vadd.f32 %v1076_v3, %v343_v17  ;;  %585 = vst.msk [vmem:[%s1266_s7 + $0x18] sm:$0xff] %vm48_vm0, %v519_v16 }
  0xf7   :  { %415 = vst.msk [vmem:[%s1265_s6 + $0x18] sm:$0xff] %vm48_vm0, %v349_v15  ;;  %584 = vst.msk [vmem:[%s1266_s7 + $0x10] sm:$0xff] %vm48_vm0, %v514_v20  ;;  %v801_v22 = vpop.f32.mrb[12].mxu0 }
  0xf8   :  { %414 = vst.msk [vmem:[%s1265_s6 + $0x10] sm:$0xff] %vm48_vm0, %v344_v19  ;;  %v769_v21 = vpop.f32.mrb[12].mxu1  ;;  %v529_v24 = vadd.f32 %v801_v22, %v1081_v4  ;;  %v523_v26 = vpop.f32.mrb[13].mxu0 }
  0xf9   :  { %v359_v23 = vadd.f32 %v769_v21, %v1076_v3  ;;  %v353_v25 = vpop.f32.mrb[13].mxu1  ;;  %v524_v28 = vadd.f32 %v1081_v4, %v523_v26 }
  0xfa   :  { %v354_v27 = vadd.f32 %v1076_v3, %v353_v25  ;;  %587 = vst.msk [vmem:[%s1266_s7 + $0x28] sm:$0xff] %vm48_vm0, %v529_v24 }
  0xfb   :  { %417 = vst.msk [vmem:[%s1265_s6 + $0x28] sm:$0xff] %vm48_vm0, %v359_v23  ;;  %586 = vst.msk [vmem:[%s1266_s7 + $0x20] sm:$0xff] %vm48_vm0, %v524_v28  ;;  %v804_v30 = vpop.f32.mrb[14].mxu0 }
  0xfc   :  { %416 = vst.msk [vmem:[%s1265_s6 + $0x20] sm:$0xff] %vm48_vm0, %v354_v27  ;;  %v772_v29 = vpop.f32.mrb[14].mxu1  ;;  %v539_v32 = vadd.f32 %v804_v30, %v1081_v4  ;;  %v533_v34 = vpop.f32.mrb[15].mxu0 }
  0xfd   :  { %v369_v31 = vadd.f32 %v772_v29, %v1076_v3  ;;  %v363_v33 = vpop.f32.mrb[15].mxu1  ;;  %v534_v36 = vadd.f32 %v1081_v4, %v533_v34 }
  0xfe   :  { %v364_v35 = vadd.f32 %v1076_v3, %v363_v33  ;;  %589 = vst.msk [vmem:[%s1266_s7 + $0x38] sm:$0xff] %vm48_vm0, %v539_v32 }
  0xff   :  { %419 = vst.msk [vmem:[%s1265_s6 + $0x38] sm:$0xff] %vm48_vm0, %v369_v31  ;;  %588 = vst.msk [vmem:[%s1266_s7 + $0x30] sm:$0xff] %vm48_vm0, %v534_v36  ;;  %v807_v38 = vpop.f32.mrb[16].mxu0 }
 0x100   :  { %418 = vst.msk [vmem:[%s1265_s6 + $0x30] sm:$0xff] %vm48_vm0, %v364_v35  ;;  %v775_v37 = vpop.f32.mrb[16].mxu1  ;;  %v549_v40 = vadd.f32 %v807_v38, %v1081_v4  ;;  %v543_v42 = vpop.f32.mrb[17].mxu0 }
 0x101   :  { %v379_v39 = vadd.f32 %v775_v37, %v1076_v3  ;;  %v373_v41 = vpop.f32.mrb[17].mxu1  ;;  %v544_v44 = vadd.f32 %v1081_v4, %v543_v42 }
 0x102   :  { %v374_v43 = vadd.f32 %v1076_v3, %v373_v41  ;;  %591 = vst.msk [vmem:[%s1266_s7 + $0x48] sm:$0xff] %vm48_vm0, %v549_v40 }
 0x103   :  { %421 = vst.msk [vmem:[%s1265_s6 + $0x48] sm:$0xff] %vm48_vm0, %v379_v39  ;;  %590 = vst.msk [vmem:[%s1266_s7 + $0x40] sm:$0xff] %vm48_vm0, %v544_v44  ;;  %v810_v46 = vpop.f32.mrb[18].mxu0 }
 0x104   :  { %420 = vst.msk [vmem:[%s1265_s6 + $0x40] sm:$0xff] %vm48_vm0, %v374_v43  ;;  %v778_v45 = vpop.f32.mrb[18].mxu1  ;;  %v559_v48 = vadd.f32 %v810_v46, %v1081_v4  ;;  %v553_v50 = vpop.f32.mrb[19].mxu0 }
 0x105   :  { %v389_v47 = vadd.f32 %v778_v45, %v1076_v3  ;;  %v383_v49 = vpop.f32.mrb[19].mxu1  ;;  %v554_v52 = vadd.f32 %v1081_v4, %v553_v50 }
 0x106   :  { %v384_v51 = vadd.f32 %v1076_v3, %v383_v49  ;;  %593 = vst.msk [vmem:[%s1266_s7 + $0x58] sm:$0xff] %vm48_vm0, %v559_v48 }
 0x107   :  { %423 = vst.msk [vmem:[%s1265_s6 + $0x58] sm:$0xff] %vm48_vm0, %v389_v47  ;;  %592 = vst.msk [vmem:[%s1266_s7 + $0x50] sm:$0xff] %vm48_vm0, %v554_v52  ;;  %v813_v54 = vpop.f32.mrb[20].mxu0 }
 0x108   :  { %422 = vst.msk [vmem:[%s1265_s6 + $0x50] sm:$0xff] %vm48_vm0, %v384_v51  ;;  %v781_v53 = vpop.f32.mrb[20].mxu1  ;;  %v569_v56 = vadd.f32 %v813_v54, %v1081_v4  ;;  %v563_v58 = vpop.f32.mrb[21].mxu0 }
 0x109   :  { %v399_v55 = vadd.f32 %v781_v53, %v1076_v3  ;;  %v393_v57 = vpop.f32.mrb[21].mxu1  ;;  %v564_v60 = vadd.f32 %v1081_v4, %v563_v58 }
 0x10a   :  { %v394_v59 = vadd.f32 %v1076_v3, %v393_v57  ;;  %595 = vst.msk [vmem:[%s1266_s7 + $0x68] sm:$0xff] %vm48_vm0, %v569_v56 }
 0x10b   :  { %425 = vst.msk [vmem:[%s1265_s6 + $0x68] sm:$0xff] %vm48_vm0, %v399_v55  ;;  %594 = vst.msk [vmem:[%s1266_s7 + $0x60] sm:$0xff] %vm48_vm0, %v564_v60  ;;  %v816_v62 = vpop.f32.mrb[22].mxu0 }
 0x10c   :  { %424 = vst.msk [vmem:[%s1265_s6 + $0x60] sm:$0xff] %vm48_vm0, %v394_v59  ;;  %v784_v61 = vpop.f32.mrb[22].mxu1  ;;  %v579_v0 = vadd.f32 %v816_v62, %v1081_v4  ;;  %v573_v2 = vpop.f32.mrb[23].mxu0 }
 0x10d   :  { %v409_v63 = vadd.f32 %v784_v61, %v1076_v3  ;;  %v403_v1 = vpop.f32.mrb[23].mxu1  ;;  %v574_v6 = vadd.f32 %v1081_v4, %v573_v2 }
 0x10e   :  { %v404_v5 = vadd.f32 %v1076_v3, %v403_v1  ;;  %597 = vst.msk [vmem:[%s1266_s7 + $0x78] sm:$0xff] %vm48_vm0, %v579_v0 }
 0x10f   :  { %427 = vst.msk [vmem:[%s1265_s6 + $0x78] sm:$0xff] %vm48_vm0, %v409_v63  ;;  %596 = vst.msk [vmem:[%s1266_s7 + $0x70] sm:$0xff] %vm48_vm0, %v574_v6 }
 0x110   :  { %426 = vst.msk [vmem:[%s1265_s6 + $0x70] sm:$0xff] %vm48_vm0, %v404_v5 }

</bundles_post_ra>
